<compile_context>
chip_gen: v7x
topology: tpu7x:2x2x1
jax: 0.10.0
libtpu: 0.0.40
codegen_flags: <defaults>
</compile_context>

<pallas_src>
import functools
from collections import OrderedDict

import numpy as np
import jax
import jax.numpy as jnp
from jax import lax
from jax.experimental import pallas as pl
from jax.experimental.pallas import tpu as pltpu


# ----------------------------------------------------------------------------
# One-time constant prep (per model / per batch-block size, NOT per forward op)
# ----------------------------------------------------------------------------
def _toeplitz_conv_weight(w, W):
    """w: (3, 3, Cin, Cout) -> (3, W*Cin, W*Cout) row-matmul weights.

    out_row[h] = sum_kh x_row[h + kh - 1] @ M[kh], with horizontal padding
    encoded as zero blocks inside M (vertical padding handled by the shift
    permutation matrices below)."""
    _, _, Cin, Cout = w.shape
    wn = np.asarray(w, dtype=np.float32)
    M = np.zeros((3, W * Cin, W * Cout), np.float32)
    for kh in range(3):
        for wo in range(W):
            for kw in range(3):
                wi = wo + kw - 1          # input column feeding output column wo
                if 0 <= wi < W:
                    M[kh, wi * Cin:(wi + 1) * Cin, wo * Cout:(wo + 1) * Cout] = wn[kh, kw]
    return jnp.asarray(M)


def _shift_matrices(nb, H):
    """Block-diagonal 0/1 permutation matrices realizing the +/-1 row shift
    (with zero halo rows) for nb images of H rows stacked along the matmul M
    dimension.  Multiplying by these on the MXU is exact (rows are copied or
    zeroed), so no halo scratch / unaligned sublane slices are needed."""
    R = nb * H
    r = np.arange(R)
    sdn = np.zeros((R, R), np.float32)      # row r <- row r-1 (0 at image top)
    sup = np.zeros((R, R), np.float32)      # row r <- row r+1 (0 at image bottom)
    keep = (r % H) != 0
    sdn[r[keep], r[keep] - 1] = 1.0
    keep = (r % H) != (H - 1)
    sup[r[keep], r[keep] + 1] = 1.0
    return jnp.asarray(sdn, jnp.bfloat16), jnp.asarray(sup, jnp.bfloat16)


def _choose_batch_block(N):
    """Fold batch into matmul M, but keep >=2 grid steps when possible so both
    v7x TensorCores get work (harmless ~0.35us extra on v5e/v6e)."""
    if N >= 2 and N % 2 == 0:
        return N // 2
    return 1


# ----------------------------------------------------------------------------
# Fused Pallas kernel:
#   conv1(3x3,pad=1)+bias+ReLU  ->  conv2(3x3,pad=1)+bias+ReLU
# One grid step = NB batch elements, flattened to M = NB*H matmul rows.
# No scratch, no halo buffers, all loads/stores 128-lane dense.
# ----------------------------------------------------------------------------
def _fused_cnn_kernel(x_ref, sdn_ref, sup_ref, w1_ref, w2_ref, b1_ref, b2_ref,
                      mid_ref, out_ref):
    # x_ref:   (NB, H, W*Cpad)        f32   (cast to bf16 in-kernel)
    # sdn_ref: (NB*H, NB*H)           bf16  0/1 shift-down permutation
    # sup_ref: (NB*H, NB*H)           bf16  0/1 shift-up permutation
    # w1_ref:  (3, W*Cpad, W*Cmid)    bf16
    # w2_ref:  (3, W*Cmid, W*Cout)    bf16
    # b1_ref:  (1, W*Cmid) f32 ; b2_ref: (1, W*Cout) f32
    # mid_ref: (NB, H, W*Cmid) bf16 ; out_ref: (NB, H, W*Cout) f32
    nb, H, K1 = x_ref.shape
    R = nb * H
    f32 = jnp.float32
    bf16 = jnp.bfloat16

    # In-kernel cast (no wrapper astype / extra HBM round-trip).
    x = x_ref[...].reshape(R, K1).astype(bf16)
    sdn = sdn_ref[...]
    sup = sup_ref[...]

    # Exact vertical shifts via permutation matmuls (MXU; rows copied or zeroed).
    x_dn = jnp.dot(sdn, x, preferred_element_type=f32).astype(bf16)
    x_up = jnp.dot(sup, x, preferred_element_type=f32).astype(bf16)

    # ---- stage 1: conv1 + bias + ReLU ------------------------------------
    acc1 = jnp.dot(x_dn, w1_ref[0], preferred_element_type=f32)
    acc1 += jnp.dot(x,    w1_ref[1], preferred_element_type=f32)
    acc1 += jnp.dot(x_up, w1_ref[2], preferred_element_type=f32)
    mid_bf = jnp.maximum(acc1 + b1_ref[...], 0.0).astype(bf16)   # (R, W*Cmid)
    mid_ref[...] = mid_bf.reshape(mid_ref.shape)                  # bf16 lane-dense store

    # ---- stage 2: conv2 + bias + ReLU ------------------------------------
    m_dn = jnp.dot(sdn, mid_bf, preferred_element_type=f32).astype(bf16)
    m_up = jnp.dot(sup, mid_bf, preferred_element_type=f32).astype(bf16)

    acc2 = jnp.dot(m_dn,   w2_ref[0], preferred_element_type=f32)
    acc2 += jnp.dot(mid_bf, w2_ref[1], preferred_element_type=f32)
    acc2 += jnp.dot(m_up,   w2_ref[2], preferred_element_type=f32)
    out_ref[...] = jnp.maximum(acc2 + b2_ref[...], 0.0).reshape(out_ref.shape)


@jax.jit
def fused_cnn_forward(x_nhwc, w1t, w2t, b1r, b2r):
    """x_nhwc: (N, H, W, Cin) f32.  Returns (mid_nhwc bf16, out_nhwc f32)."""
    N, H, W, Cin = x_nhwc.shape
    Cpad = w1t.shape[1] // W
    WCmid = w1t.shape[2]
    WCout = w2t.shape[2]
    Cmid, Cout = WCmid // W, WCout // W

    # Zero-pad channels so a flattened image row is 128-lane dense (K = 128);
    # dtype stays f32 — the bf16 cast happens inside the kernel.
    if Cpad > Cin:
        x_nhwc = jnp.pad(x_nhwc, ((0, 0), (0, 0), (0, 0), (0, Cpad - Cin)))
    x_rows = x_nhwc.reshape(N, H, W * Cpad)

    NB = _choose_batch_block(N)
    steps = N // NB
    R = NB * H
    sdn, sup = _shift_matrices(NB, H)       # tiny jit-time constants

    mid_rows, out_rows = pl.pallas_call(
        _fused_cnn_kernel,
        out_shape=(
            jax.ShapeDtypeStruct((N, H, WCmid), jnp.bfloat16),
            jax.ShapeDtypeStruct((N, H, WCout), jnp.float32),
        ),
        grid_spec=pltpu.PrefetchScalarGridSpec(
            num_scalar_prefetch=0,
            grid=(steps,),
            in_specs=[
                pl.BlockSpec((NB, H, W * Cpad), lambda n: (n, 0, 0)),
                pl.BlockSpec((R, R), lambda n: (0, 0)),
                pl.BlockSpec((R, R), lambda n: (0, 0)),
                pl.BlockSpec((3, W * Cpad, WCmid), lambda n: (0, 0, 0)),
                pl.BlockSpec((3, WCmid, WCout), lambda n: (0, 0, 0)),
                pl.BlockSpec((1, WCmid), lambda n: (0, 0)),
                pl.BlockSpec((1, WCout), lambda n: (0, 0)),
            ],
            out_specs=[
                pl.BlockSpec((NB, H, WCmid), lambda n: (n, 0, 0)),
                pl.BlockSpec((NB, H, WCout), lambda n: (n, 0, 0)),
            ],
        ),
        compiler_params=pltpu.CompilerParams(
            dimension_semantics=("parallel",),   # 2 steps -> both v7x TCs busy
        ),
    )(x_rows, sdn, sup, w1t, w2t, b1r, b2r)

    return mid_rows.reshape(N, H, W, Cmid), out_rows.reshape(N, H, W, Cout)


# ----------------------------------------------------------------------------
# Minimal layer / forward-hook machinery mimicking nn.Module
# ----------------------------------------------------------------------------
class _HookHandle:
    def __init__(self, layer, fn):
        self._layer, self._fn = layer, fn

    def remove(self):
        if self._fn in self._layer._hooks:
            self._layer._hooks.remove(self._fn)


class Layer:
    def __init__(self):
        self._hooks = []

    def register_forward_hook(self, fn):
        self._hooks.append(fn)
        return _HookHandle(self, fn)

    def __call__(self, *args, **kwargs):
        out = self.forward(*args, **kwargs)
        for h in list(self._hooks):
            h(self, args, out)
        return out


class ConvStage(Layer):
    """Named sub-layer holding the stage parameters.  Its math runs inside the
    parent's fused Pallas kernel; forward routes the precomputed stage output
    so registered forward hooks observe exactly this stage's output."""

    def __init__(self, w, b):
        super().__init__()
        self.w, self.b = w, b

    def forward(self, y):
        return y


class TinyCNN(Layer):
    """conv1(4->8, 3x3, pad=1)+ReLU -> conv2(8->8, 3x3, pad=1)+ReLU, fused into
    one Pallas kernel that emits both stage outputs."""

    def __init__(self, key, H=16, W=16, cin=4, cmid=8, cout=8):
        super().__init__()
        k1, k2, k3, k4 = jax.random.split(key, 4)
        self.conv1 = ConvStage(
            0.1 * jax.random.normal(k1, (3, 3, cin, cmid), jnp.float32),
            0.1 * jax.random.normal(k2, (cmid,), jnp.float32),
        )
        self.conv2 = ConvStage(
            0.1 * jax.random.normal(k3, (3, 3, cmid, cout), jnp.float32),
            0.1 * jax.random.normal(k4, (cout,), jnp.float32),
        )
        # Lane-pad Cin so W*Cpad is a multiple of 128 (full 128-lane rows, K=128).
        lane = 128
        cpad = cin
        if (W * cin) % lane != 0 and lane % W == 0:
            cpw = lane // W
            cpad = -(-cin // cpw) * cpw
        w1p = jnp.pad(self.conv1.w, ((0, 0), (0, 0), (0, cpad - cin), (0, 0)))
        # One-time weight layout prep for the fused row-matmul kernel.
        self._w1t = _toeplitz_conv_weight(w1p, W).astype(jnp.bfloat16)          # (3, W*cpad, W*cmid)
        self._w2t = _toeplitz_conv_weight(self.conv2.w, W).astype(jnp.bfloat16)  # (3, W*cmid, W*cout)
        self._b1r = jnp.tile(self.conv1.b, W).reshape(1, W * cmid)   # f32, lane-dense
        self._b2r = jnp.tile(self.conv2.b, W).reshape(1, W * cout)   # f32, lane-dense

    def forward(self, x_nhwc):
        mid, out = fused_cnn_forward(x_nhwc, self._w1t, self._w2t, self._b1r, self._b2r)
        mid = self.conv1(mid)   # fires conv1 forward hooks with stage-1 output (bf16)
        out = self.conv2(out)   # fires conv2 forward hooks with stage-2 output (f32)
        return out


# ----------------------------------------------------------------------------
# IntermediateLayerGetter (identical semantics to the PyTorch module)
# ----------------------------------------------------------------------------
def rgetattr(obj, attr, *args):
    def _getattr(obj, attr):
        return getattr(obj, attr, *args)
    return functools.reduce(_getattr, [obj] + attr.split('.'))


class IntermediateLayerGetter:
    def __init__(self, model, return_layers, keep_output=True):
        self._model = model
        self.return_layers = return_layers
        self.keep_output = keep_output

    def __call__(self, *args, **kwargs):
        ret = OrderedDict()
        handles = []
        for name, new_name in self.return_layers.items():
            layer = rgetattr(self._model, name)

            def hook(module, inputs, output, new_name=new_name):
                if new_name in ret:
                    if type(ret[new_name]) is list:
                        ret[new_name].append(output)
                    else:
                        ret[new_name] = [ret[new_name], output]
                else:
                    ret[new_name] = output

            try:
                h = layer.register_forward_hook(hook)
            except AttributeError:
                raise AttributeError(f'Module {name} not found in model')
            handles.append(h)

        if self.keep_output:
            output = self._model(*args, **kwargs)
        else:
            self._model(*args, **kwargs)
            output = None

        for h in handles:
            h.remove()
        return ret, output


# ----------------------------------------------------------------------------
# Plain-JAX reference conv for verification
# ----------------------------------------------------------------------------
def _ref_conv_relu(x_nhwc, w, b):
    y = lax.conv_general_dilated(
        x_nhwc, w, window_strides=(1, 1), padding="SAME",
        dimension_numbers=("NHWC", "HWIO", "NHWC"),
        precision=lax.Precision.HIGHEST,
    )
    return jnp.maximum(y + b, 0.0)


if __name__ == "__main__":
    key = jax.random.PRNGKey(0)
    kx, km = jax.random.split(key)

    # PyTorch-style NCHW input: (batch=2, channels=4, H=16, W=16)
    x_nchw = jax.random.normal(kx, (2, 4, 16, 16), jnp.float32)
    x_nhwc = jnp.transpose(x_nchw, (0, 2, 3, 1))          # kernel layout

    model = TinyCNN(km, H=16, W=16, cin=4, cmid=8, cout=8)
    getter = IntermediateLayerGetter(
        model, return_layers={"conv1": "feat1", "conv2": "feat2"},
        keep_output=True,
    )

    ret, output = getter(x_nhwc)
    output = jax.block_until_ready(output)
    ret = {k: jax.block_until_ready(v) for k, v in ret.items()}

    # Reference with the kernel's numerics (bf16 operands, f32 accumulate).
    f32 = jnp.float32
    xb = x_nhwc.astype(jnp.bfloat16).astype(f32)
    w1b = model.conv1.w.astype(jnp.bfloat16).astype(f32)
    w2b = model.conv2.w.astype(jnp.bfloat16).astype(f32)
    ref1 = _ref_conv_relu(xb, w1b, model.conv1.b)
    feat1_f32 = ret["feat1"].astype(f32)
    ref2 = _ref_conv_relu(feat1_f32, w2b, model.conv2.b)

    assert ret["feat1"].shape == (2, 16, 16, 8)
    assert ret["feat1"].dtype == jnp.bfloat16
    assert ret["feat2"].shape == (2, 16, 16, 8)
    assert jnp.allclose(feat1_f32, ref1, atol=5e-3, rtol=5e-3)
    assert jnp.allclose(ret["feat2"], ref2, atol=5e-3, rtol=5e-3)
    assert jnp.allclose(output, ret["feat2"])

    print("KERNEL_OK")
</pallas_src>

<mosaic_0001>
module attributes {stable_mosaic.version = 11 : i64} {
  func.func @_fused_cnn_kernel(%arg0: i32, %arg1: memref<1x16x128xf32, #tpu.memory_space<vmem>>, %arg2: memref<16x16xbf16, #tpu.memory_space<vmem>>, %arg3: memref<16x16xbf16, #tpu.memory_space<vmem>>, %arg4: memref<3x128x128xbf16, #tpu.memory_space<vmem>>, %arg5: memref<3x128x128xbf16, #tpu.memory_space<vmem>>, %arg6: memref<1x128xf32, #tpu.memory_space<vmem>>, %arg7: memref<1x128xf32, #tpu.memory_space<vmem>>, %arg8: memref<1x16x128xbf16, #tpu.memory_space<vmem>>, %arg9: memref<1x16x128xf32, #tpu.memory_space<vmem>>) attributes {dimension_semantics = [#tpu.dimension_semantics<parallel>], iteration_bounds = array<i64: 2>, scalar_prefetch = 0 : i64, scratch_operands = 0 : i64, tpu.core_type = #tpu.core_type<tc>, window_params = [{transform_indices = @transform_0, window_bounds = array<i64: 1, 16, 128>}, {pipeline_mode = #tpu.pipeline_mode<synchronous>, transform_indices = @transform_1, window_bounds = array<i64: 16, 16>}, {pipeline_mode = #tpu.pipeline_mode<synchronous>, transform_indices = @transform_2, window_bounds = array<i64: 16, 16>}, {pipeline_mode = #tpu.pipeline_mode<synchronous>, transform_indices = @transform_3, window_bounds = array<i64: 3, 128, 128>}, {pipeline_mode = #tpu.pipeline_mode<synchronous>, transform_indices = @transform_4, window_bounds = array<i64: 3, 128, 128>}, {pipeline_mode = #tpu.pipeline_mode<synchronous>, transform_indices = @transform_5, window_bounds = array<i64: 1, 128>}, {pipeline_mode = #tpu.pipeline_mode<synchronous>, transform_indices = @transform_6, window_bounds = array<i64: 1, 128>}, {transform_indices = @transform_7, window_bounds = array<i64: 1, 16, 128>}, {transform_indices = @transform_8, window_bounds = array<i64: 1, 16, 128>}]} {
    %c0 = arith.constant 0 : index
    %c0_0 = arith.constant 0 : index
    %c0_1 = arith.constant 0 : index
    %0 = vector.load %arg1[%c0, %c0_0, %c0_1] : memref<1x16x128xf32, #tpu.memory_space<vmem>>, vector<1x16x128xf32>
    %1 = vector.shape_cast %0 : vector<1x16x128xf32> to vector<16x128xf32>
    %2 = arith.truncf %1 : vector<16x128xf32> to vector<16x128xbf16>
    %c0_2 = arith.constant 0 : index
    %c0_3 = arith.constant 0 : index
    %3 = vector.load %arg2[%c0_2, %c0_3] : memref<16x16xbf16, #tpu.memory_space<vmem>>, vector<16x16xbf16>
    %c0_4 = arith.constant 0 : index
    %c0_5 = arith.constant 0 : index
    %4 = vector.load %arg3[%c0_4, %c0_5] : memref<16x16xbf16, #tpu.memory_space<vmem>>, vector<16x16xbf16>
    %cst = arith.constant dense<0.000000e+00> : vector<16x128xf32>
    %5 = tpu.matmul %3, %2, %cst {dimension_numbers = #tpu.dot_dimension_numbers<[1], [0], [0], [1], [0, 0, 1, 1], [], []>} : vector<16x16xbf16>, vector<16x128xbf16>, vector<16x128xf32> -> vector<16x128xf32>
    %6 = arith.truncf %5 : vector<16x128xf32> to vector<16x128xbf16>
    %cst_6 = arith.constant dense<0.000000e+00> : vector<16x128xf32>
    %7 = tpu.matmul %4, %2, %cst_6 {dimension_numbers = #tpu.dot_dimension_numbers<[1], [0], [0], [1], [0, 0, 1, 1], [], []>} : vector<16x16xbf16>, vector<16x128xbf16>, vector<16x128xf32> -> vector<16x128xf32>
    %8 = arith.truncf %7 : vector<16x128xf32> to vector<16x128xbf16>
    %c0_7 = arith.constant 0 : index
    %c0_8 = arith.constant 0 : index
    %c0_9 = arith.constant 0 : index
    %9 = vector.load %arg4[%c0_7, %c0_8, %c0_9] : memref<3x128x128xbf16, #tpu.memory_space<vmem>>, vector<1x128x128xbf16>
    %10 = vector.shape_cast %9 : vector<1x128x128xbf16> to vector<128x128xbf16>
    %cst_10 = arith.constant dense<0.000000e+00> : vector<16x128xf32>
    %11 = tpu.matmul %6, %10, %cst_10 {dimension_numbers = #tpu.dot_dimension_numbers<[1], [0], [0], [1], [0, 0, 1, 1], [], []>} : vector<16x128xbf16>, vector<128x128xbf16>, vector<16x128xf32> -> vector<16x128xf32>
    %c1 = arith.constant 1 : index
    %c0_11 = arith.constant 0 : index
    %c0_12 = arith.constant 0 : index
    %12 = vector.load %arg4[%c1, %c0_11, %c0_12] : memref<3x128x128xbf16, #tpu.memory_space<vmem>>, vector<1x128x128xbf16>
    %13 = vector.shape_cast %12 : vector<1x128x128xbf16> to vector<128x128xbf16>
    %cst_13 = arith.constant dense<0.000000e+00> : vector<16x128xf32>
    %14 = tpu.matmul %2, %13, %cst_13 {dimension_numbers = #tpu.dot_dimension_numbers<[1], [0], [0], [1], [0, 0, 1, 1], [], []>} : vector<16x128xbf16>, vector<128x128xbf16>, vector<16x128xf32> -> vector<16x128xf32>
    %15 = arith.addf %11, %14 : vector<16x128xf32>
    %c2 = arith.constant 2 : index
    %c0_14 = arith.constant 0 : index
    %c0_15 = arith.constant 0 : index
    %16 = vector.load %arg4[%c2, %c0_14, %c0_15] : memref<3x128x128xbf16, #tpu.memory_space<vmem>>, vector<1x128x128xbf16>
    %17 = vector.shape_cast %16 : vector<1x128x128xbf16> to vector<128x128xbf16>
    %cst_16 = arith.constant dense<0.000000e+00> : vector<16x128xf32>
    %18 = tpu.matmul %8, %17, %cst_16 {dimension_numbers = #tpu.dot_dimension_numbers<[1], [0], [0], [1], [0, 0, 1, 1], [], []>} : vector<16x128xbf16>, vector<128x128xbf16>, vector<16x128xf32> -> vector<16x128xf32>
    %19 = arith.addf %15, %18 : vector<16x128xf32>
    %c0_17 = arith.constant 0 : index
    %c0_18 = arith.constant 0 : index
    %20 = vector.load %arg6[%c0_17, %c0_18] : memref<1x128xf32, #tpu.memory_space<vmem>>, vector<1x128xf32>
    %21 = vector.broadcast %20 : vector<1x128xf32> to vector<16x128xf32>
    %22 = arith.addf %19, %21 : vector<16x128xf32>
    %cst_19 = arith.constant 0.000000e+00 : f32
    %23 = vector.broadcast %cst_19 : f32 to vector<16x128xf32>
    %24 = arith.maximumf %22, %23 : vector<16x128xf32>
    %25 = arith.truncf %24 : vector<16x128xf32> to vector<16x128xbf16>
    %26 = vector.shape_cast %25 : vector<16x128xbf16> to vector<1x16x128xbf16>
    %c0_20 = arith.constant 0 : index
    %c0_21 = arith.constant 0 : index
    %c0_22 = arith.constant 0 : index
    %27 = vector.load %arg8[%c0_20, %c0_21, %c0_22] : memref<1x16x128xbf16, #tpu.memory_space<vmem>>, vector<1x16x128xbf16>
    tpu.vector_store %arg8[%c0_20, %c0_21, %c0_22], %26 {strides = array<i32>} : memref<1x16x128xbf16, #tpu.memory_space<vmem>>, vector<1x16x128xbf16>,
    %cst_23 = arith.constant dense<0.000000e+00> : vector<16x128xf32>
    %28 = tpu.matmul %3, %25, %cst_23 {dimension_numbers = #tpu.dot_dimension_numbers<[1], [0], [0], [1], [0, 0, 1, 1], [], []>} : vector<16x16xbf16>, vector<16x128xbf16>, vector<16x128xf32> -> vector<16x128xf32>
    %29 = arith.truncf %28 : vector<16x128xf32> to vector<16x128xbf16>
    %cst_24 = arith.constant dense<0.000000e+00> : vector<16x128xf32>
    %30 = tpu.matmul %4, %25, %cst_24 {dimension_numbers = #tpu.dot_dimension_numbers<[1], [0], [0], [1], [0, 0, 1, 1], [], []>} : vector<16x16xbf16>, vector<16x128xbf16>, vector<16x128xf32> -> vector<16x128xf32>
    %31 = arith.truncf %30 : vector<16x128xf32> to vector<16x128xbf16>
    %c0_25 = arith.constant 0 : index
    %c0_26 = arith.constant 0 : index
    %c0_27 = arith.constant 0 : index
    %32 = vector.load %arg5[%c0_25, %c0_26, %c0_27] : memref<3x128x128xbf16, #tpu.memory_space<vmem>>, vector<1x128x128xbf16>
    %33 = vector.shape_cast %32 : vector<1x128x128xbf16> to vector<128x128xbf16>
    %cst_28 = arith.constant dense<0.000000e+00> : vector<16x128xf32>
    %34 = tpu.matmul %29, %33, %cst_28 {dimension_numbers = #tpu.dot_dimension_numbers<[1], [0], [0], [1], [0, 0, 1, 1], [], []>} : vector<16x128xbf16>, vector<128x128xbf16>, vector<16x128xf32> -> vector<16x128xf32>
    %c1_29 = arith.constant 1 : index
    %c0_30 = arith.constant 0 : index
    %c0_31 = arith.constant 0 : index
    %35 = vector.load %arg5[%c1_29, %c0_30, %c0_31] : memref<3x128x128xbf16, #tpu.memory_space<vmem>>, vector<1x128x128xbf16>
    %36 = vector.shape_cast %35 : vector<1x128x128xbf16> to vector<128x128xbf16>
    %cst_32 = arith.constant dense<0.000000e+00> : vector<16x128xf32>
    %37 = tpu.matmul %25, %36, %cst_32 {dimension_numbers = #tpu.dot_dimension_numbers<[1], [0], [0], [1], [0, 0, 1, 1], [], []>} : vector<16x128xbf16>, vector<128x128xbf16>, vector<16x128xf32> -> vector<16x128xf32>
    %38 = arith.addf %34, %37 : vector<16x128xf32>
    %c2_33 = arith.constant 2 : index
    %c0_34 = arith.constant 0 : index
    %c0_35 = arith.constant 0 : index
    %39 = vector.load %arg5[%c2_33, %c0_34, %c0_35] : memref<3x128x128xbf16, #tpu.memory_space<vmem>>, vector<1x128x128xbf16>
    %40 = vector.shape_cast %39 : vector<1x128x128xbf16> to vector<128x128xbf16>
    %cst_36 = arith.constant dense<0.000000e+00> : vector<16x128xf32>
    %41 = tpu.matmul %31, %40, %cst_36 {dimension_numbers = #tpu.dot_dimension_numbers<[1], [0], [0], [1], [0, 0, 1, 1], [], []>} : vector<16x128xbf16>, vector<128x128xbf16>, vector<16x128xf32> -> vector<16x128xf32>
    %42 = arith.addf %38, %41 : vector<16x128xf32>
    %c0_37 = arith.constant 0 : index
    %c0_38 = arith.constant 0 : index
    %43 = vector.load %arg7[%c0_37, %c0_38] : memref<1x128xf32, #tpu.memory_space<vmem>>, vector<1x128xf32>
    %44 = vector.broadcast %43 : vector<1x128xf32> to vector<16x128xf32>
    %45 = arith.addf %42, %44 : vector<16x128xf32>
    %cst_39 = arith.constant 0.000000e+00 : f32
    %46 = vector.broadcast %cst_39 : f32 to vector<16x128xf32>
    %47 = arith.maximumf %45, %46 : vector<16x128xf32>
    %48 = vector.shape_cast %47 : vector<16x128xf32> to vector<1x16x128xf32>
    %c0_40 = arith.constant 0 : index
    %c0_41 = arith.constant 0 : index
    %c0_42 = arith.constant 0 : index
    %49 = vector.load %arg9[%c0_40, %c0_41, %c0_42] : memref<1x16x128xf32, #tpu.memory_space<vmem>>, vector<1x16x128xf32>
    tpu.vector_store %arg9[%c0_40, %c0_41, %c0_42], %48 {strides = array<i32>} : memref<1x16x128xf32, #tpu.memory_space<vmem>>, vector<1x16x128xf32>,
    return
  }
  func.func @transform_0(%arg0: i32) -> (i32, i32, i32) {
    %c0_i32 = arith.constant 0 : i32
    %c0_i32_0 = arith.constant 0 : i32
    %c0_i32_1 = arith.constant 0 : i32
    return %arg0, %c0_i32, %c0_i32_0 : i32, i32, i32
  }
  func.func @transform_1(%arg0: i32) -> (i32, i32) {
    %c0_i32 = arith.constant 0 : i32
    %c0_i32_0 = arith.constant 0 : i32
    %c0_i32_1 = arith.constant 0 : i32
    return %c0_i32, %c0_i32_0 : i32, i32
  }
  func.func @transform_2(%arg0: i32) -> (i32, i32) {
    %c0_i32 = arith.constant 0 : i32
    %c0_i32_0 = arith.constant 0 : i32
    %c0_i32_1 = arith.constant 0 : i32
    return %c0_i32, %c0_i32_0 : i32, i32
  }
  func.func @transform_3(%arg0: i32) -> (i32, i32, i32) {
    %c0_i32 = arith.constant 0 : i32
    %c0_i32_0 = arith.constant 0 : i32
    %c0_i32_1 = arith.constant 0 : i32
    %c0_i32_2 = arith.constant 0 : i32
    return %c0_i32, %c0_i32_0, %c0_i32_1 : i32, i32, i32
  }
  func.func @transform_4(%arg0: i32) -> (i32, i32, i32) {
    %c0_i32 = arith.constant 0 : i32
    %c0_i32_0 = arith.constant 0 : i32
    %c0_i32_1 = arith.constant 0 : i32
    %c0_i32_2 = arith.constant 0 : i32
    return %c0_i32, %c0_i32_0, %c0_i32_1 : i32, i32, i32
  }
  func.func @transform_5(%arg0: i32) -> (i32, i32) {
    %c0_i32 = arith.constant 0 : i32
    %c0_i32_0 = arith.constant 0 : i32
    %c0_i32_1 = arith.constant 0 : i32
    return %c0_i32, %c0_i32_0 : i32, i32
  }
  func.func @transform_6(%arg0: i32) -> (i32, i32) {
    %c0_i32 = arith.constant 0 : i32
    %c0_i32_0 = arith.constant 0 : i32
    %c0_i32_1 = arith.constant 0 : i32
    return %c0_i32, %c0_i32_0 : i32, i32
  }
  func.func @transform_7(%arg0: i32) -> (i32, i32, i32) {
    %c0_i32 = arith.constant 0 : i32
    %c0_i32_0 = arith.constant 0 : i32
    %c0_i32_1 = arith.constant 0 : i32
    return %arg0, %c0_i32, %c0_i32_0 : i32, i32, i32
  }
  func.func @transform_8(%arg0: i32) -> (i32, i32, i32) {
    %c0_i32 = arith.constant 0 : i32
    %c0_i32_0 = arith.constant 0 : i32
    %c0_i32_1 = arith.constant 0 : i32
    return %arg0, %c0_i32, %c0_i32_0 : i32, i32, i32
  }
}

</mosaic_0001>

<bundles_post_ra>
// kernel: fused_cnn_forward.1
= control target key start
LH: loop header
LB: loop body
LE: loop exit
PB: predicated region body
PF: predicated region fallthrough
CT: control target
= control target key end

     0   :  { %s1738_s27 = smov 0   ;;  %s2006_s0 = inlined_call_operand.vmem [shape: f32[2,16,128], index: 0, kind: input, shape index: {}]   ;;  %s2007_s1 = inlined_call_operand.vmem [shape: bf16[16,16], index: 1, kind: input, shape index: {}]   ;;  %s2008_s2 = inlined_call_operand.vmem [shape: bf16[16,16], index: 2, kind: input, shape index: {}]   ;;  %s2009_s3 = inlined_call_operand.vmem [shape: bf16[3,128,128], index: 3, kind: input, shape index: {}]   ;;  %s2010_s4 = inlined_call_operand.vmem [shape: bf16[3,128,128], index: 4, kind: input, shape index: {}]   ;;  %s2011_s5 = inlined_call_operand.vmem [shape: f32[1,128], index: 5, kind: input, shape index: {}]   ;;  %s2012_s6 = inlined_call_operand.vmem [shape: f32[1,128], index: 6, kind: input, shape index: {}]   ;;  %s2013_s7 = inlined_call_operand.vmem [shape: bf16[2,16,128], index: 7, kind: output, shape index: {0}]   ;;  %s2014_s8 = inlined_call_operand.vmem [shape: f32[2,16,128], index: 8, kind: output, shape index: {1}]  }
   0x1 LB: > { %s1272_s28 = sadd.s32 4294967295, %s1689_s27   ;;  %p1276_p0 = scmp.ge.s32.totalorder %s1689_s27, 1  ;;  %s1689_s27 = sphi %s1738_s27, %s19_s27  }
   0x2   : > { %p265_p1 = scmp.lt.s32.totalorder %s1689_s27, 3 }
   0x4   : > { %p266_p2 = pnand %p1276_p0, %p265_p1 }
   0x5   : > { %p304_p3 = scmp.lt.s32.totalorder (!%p266_p2), %s1272_s28, 1  ;;  %v1691_v0 = vmov (!%p266_p2), 0.0   ;;  %vm1692_vm0 = vmmov (!%p266_p2), 0   ;;  %v1763_v4 = vld [vmem:[%s2007_s1] sm:$0xff] (!%p266_p2)   ;;  %vm332_vm1 = vcmask (!%p266_p2), 130048   ;;  %v1636_v8 = vld [vmem:[%s2009_s3 + $0x48] sm:$0xff] (!%p266_p2)  }
   0x6   : > { %269 = sbr.rel (%p266_p2) target bundleno = 904 (0x388), region = 48  ;;  %1479 = vmatprep.subr.bf16.mxu0 (!%p266_p2), %v1691_v0  ;;  %1485 = vmatprep.subr.bf16.mxu1 (!%p266_p2), %v1691_v0  ;;  %v1768_v5 = vld [vmem:[%s2008_s2] sm:$0xff] (!%p266_p2)   ;;  %v1645_v9 = vld [vmem:[%s2009_s3 + $0x8] sm:$0xff] (!%p266_p2)   ;;  %v1637_v10 = vld [vmem:[%s2009_s3 + $0x50] sm:$0xff] (!%p266_p2)  }
   0x7   : > { %1481 = vmatprep.mubr.msk.bf16.mxu0 (!%p266_p2), %vm1692_vm0, %v1691_v0  ;;  %1487 = vmatprep.mubr.msk.bf16.mxu1 (!%p266_p2), %vm1692_vm0, %v1691_v0  ;;  %v1635_v6 = vld [vmem:[%s2009_s3 + $0x40] sm:$0xff] (!%p266_p2)   ;;  %v1647_v11 = vld [vmem:[%s2009_s3 + $0x10] sm:$0xff] (!%p266_p2)   ;;  %v1638_v12 = vld [vmem:[%s2009_s3 + $0x58] sm:$0xff] (!%p266_p2)  }
   0x8   : > { %v1643_v7 = vld [vmem:[%s2009_s3] sm:$0xff] (!%p266_p2)   ;;  %v1649_v13 = vld [vmem:[%s2009_s3 + $0x18] sm:$0xff] (!%p266_p2)   ;;  %v1640_v16 = vld [vmem:[%s2009_s3 + $0x68] sm:$0xff] (!%p266_p2)  }
   0x9   : > { %v1639_v14 = vld [vmem:[%s2009_s3 + $0x60] sm:$0xff] (!%p266_p2)   ;;  %v1653_v17 = vld [vmem:[%s2009_s3 + $0x28] sm:$0xff] (!%p266_p2)   ;;  %v1641_v18 = vld [vmem:[%s2009_s3 + $0x70] sm:$0xff] (!%p266_p2)  }
   0xa   : > { %v1651_v15 = vld [vmem:[%s2009_s3 + $0x20] sm:$0xff] (!%p266_p2)   ;;  %v1655_v19 = vld [vmem:[%s2009_s3 + $0x30] sm:$0xff] (!%p266_p2)   ;;  %v1642_v20 = vld [vmem:[%s2009_s3 + $0x78] sm:$0xff] (!%p266_p2)  }
   0xb   : > { %v1644_v21 = vld [vmem:[%s2009_s3 + $0x80] sm:$0xff] (!%p266_p2)   ;;  %v1646_v22 = vld [vmem:[%s2009_s3 + $0x88] sm:$0xff] (!%p266_p2)   ;;  %v1648_v23 = vld [vmem:[%s2009_s3 + $0x90] sm:$0xff] (!%p266_p2)  }
   0xc   : > { %v1650_v24 = vld [vmem:[%s2009_s3 + $0x98] sm:$0xff] (!%p266_p2)   ;;  %v1652_v25 = vld [vmem:[%s2009_s3 + $0xa0] sm:$0xff] (!%p266_p2)   ;;  %v1654_v26 = vld [vmem:[%s2009_s3 + $0xa8] sm:$0xff] (!%p266_p2)  }
   0xd   : > { %s2016_s28 = smov (!%p304_p3, %s1272_s28), 1  ;;  %v1656_v27 = vld [vmem:[%s2009_s3 + $0xb0] sm:$0xff]   ;;  %v1657_v28 = vld [vmem:[%s2009_s3 + $0x38] sm:$0xff]   ;;  %v1343_v49 = vld [vmem:[%s2011_s5] ss:$0 sm:$0xff] }
   0xe   : > { %s1407_s29 = sshll.u32 %s2016_s28, 4  ;;  %v1658_v29 = vld [vmem:[%s2009_s3 + $0xb8] sm:$0xff]   ;;  %s1408_s30 = sshll.u32 %s2016_s28, 3  ;;  %v1659_v62 = vld [vmem:[%s2010_s4 + $0x40] sm:$0xff]  }
   0xf   : > { %s308_s10 = scalar_lea.vmem %s2006_s0, %s1407_s29  ;;  %s313_s11 = scalar_lea.vmem %s2013_s7, %s1408_s30  ;;  %v1667_v63 = vld [vmem:[%s2010_s4] sm:$0xff]  }
  0x10   : > { %v320_v1 = vld [vmem:[%s308_s10] sm:$0xff]  ;;  %v321_v2 = vld [vmem:[%s308_s10 + $0x8] sm:$0xff]  ;;  %s318_s26 = scalar_lea.vmem %s2014_s8, %s1407_s29 }
  0x11   : > { %v322_v3 = vpack.c.bf16 %v321_v2, %v320_v1  ;;  %v1660_v1 = vld [vmem:[%s2010_s4 + $0x48] sm:$0xff]  }
  0x12   : > { %v1669_v2 = vld [vmem:[%s2010_s4 + $0x8] sm:$0xff]  }
  0x13   : > { %1480 = vmatpush3.bf16.msra.mxu0 %v322_v3  ;;  %1486 = vmatpush3.bf16.msra.mxu1 %v322_v3 }
  0x14   : > { %1491 = vmatprep.subr.bf16.mxu0 %v1691_v0  ;;  %1511 = vmatprep.subr.bf16.mxu1 %v1691_v0 }
  0x16   : > { %1482 = vmatmul.mubr.msk.bf16.vlgmr.msra.gmra.mrb[0].mxu0 %vm332_vm1, %v1763_v4  ;;  %1488 = vmatmul.mubr.msk.bf16.vlgmr.msra.gmra.mrb[0].mxu1 %vm332_vm1, %v1768_v5 }
  0x17   : > { %1492 = vmatpush3.bf16.msra.mxu0 %v1635_v6  ;;  %1507 = vmatprep.mubr.msk.bf16.mxu0 %vm1692_vm0, %v1691_v0  ;;  %v1673_v6 = vld [vmem:[%s2010_s4 + $0x18] sm:$0xff]  }
  0x18   : > { %1493 = vmatprep.subr.bf16.mxu0 %v1691_v0  ;;  %1512 = vmatpush3.bf16.msra.mxu1 %v1643_v7  ;;  %v1663_v7 = vld [vmem:[%s2010_s4 + $0x60] sm:$0xff]  }
  0x19   : > { %1513 = vmatprep.subr.bf16.mxu1 %v1691_v0  ;;  %1527 = vmatprep.mubr.msk.bf16.mxu1 %vm1692_vm0, %v1691_v0 }
  0x1b   : > { %1494 = vmatpush3.bf16.msra.mxu0 %v1636_v8  ;;  %v1675_v8 = vld [vmem:[%s2010_s4 + $0x20] sm:$0xff]  }
  0x1c   : > { %1495 = vmatprep.subr.bf16.mxu0 %v1691_v0  ;;  %1514 = vmatpush3.bf16.msra.mxu1 %v1645_v9  ;;  %v1664_v9 = vld [vmem:[%s2010_s4 + $0x68] sm:$0xff]  }
  0x1d   : > { %1515 = vmatprep.subr.bf16.mxu1 %v1691_v0 }
  0x1f   : > { %1496 = vmatpush3.bf16.msra.mxu0 %v1637_v10  ;;  %v1677_v10 = vld [vmem:[%s2010_s4 + $0x28] sm:$0xff]  }
  0x20   : > { %1497 = vmatprep.subr.bf16.mxu0 %v1691_v0  ;;  %1516 = vmatpush3.bf16.msra.mxu1 %v1647_v11  ;;  %v1665_v11 = vld [vmem:[%s2010_s4 + $0x70] sm:$0xff]  }
  0x21   : > { %1517 = vmatprep.subr.bf16.mxu1 %v1691_v0 }
  0x23   : > { %1498 = vmatpush3.bf16.msra.mxu0 %v1638_v12  ;;  %v1679_v12 = vld [vmem:[%s2010_s4 + $0x30] sm:$0xff]  }
  0x24   : > { %1499 = vmatprep.subr.bf16.mxu0 %v1691_v0  ;;  %1518 = vmatpush3.bf16.msra.mxu1 %v1649_v13  ;;  %v1666_v13 = vld [vmem:[%s2010_s4 + $0x78] sm:$0xff]  }
  0x25   : > { %1519 = vmatprep.subr.bf16.mxu1 %v1691_v0 }
  0x27   : > { %1500 = vmatpush3.bf16.msra.mxu0 %v1639_v14  ;;  %v1668_v14 = vld [vmem:[%s2010_s4 + $0x80] sm:$0xff]  }
  0x28   : > { %1501 = vmatprep.subr.bf16.mxu0 %v1691_v0  ;;  %1520 = vmatpush3.bf16.msra.mxu1 %v1651_v15  ;;  %v1670_v15 = vld [vmem:[%s2010_s4 + $0x88] sm:$0xff]  }
  0x29   : > { %1521 = vmatprep.subr.bf16.mxu1 %v1691_v0 }
  0x2b   : > { %1502 = vmatpush3.bf16.msra.mxu0 %v1640_v16  ;;  %v1672_v16 = vld [vmem:[%s2010_s4 + $0x90] sm:$0xff]  }
  0x2c   : > { %1503 = vmatprep.subr.bf16.mxu0 %v1691_v0  ;;  %1522 = vmatpush3.bf16.msra.mxu1 %v1653_v17  ;;  %v1674_v17 = vld [vmem:[%s2010_s4 + $0x98] sm:$0xff]  }
  0x2d   : > { %1523 = vmatprep.subr.bf16.mxu1 %v1691_v0 }
  0x2f   : > { %1504 = vmatpush3.bf16.msra.mxu0 %v1641_v18  ;;  %v1676_v18 = vld [vmem:[%s2010_s4 + $0xa0] sm:$0xff]  }
  0x30   : > { %1505 = vmatprep.subr.bf16.mxu0 %v1691_v0  ;;  %1524 = vmatpush3.bf16.msra.mxu1 %v1655_v19  ;;  %v1678_v19 = vld [vmem:[%s2010_s4 + $0xa8] sm:$0xff]  }
  0x31   : > { %1525 = vmatprep.subr.bf16.mxu1 %v1691_v0 }
  0x33   : > { %1506 = vmatpush3.bf16.msra.mxu0 %v1642_v20  ;;  %v1680_v20 = vld [vmem:[%s2010_s4 + $0xb0] sm:$0xff]  }
  0x34   : > { %1531 = vmatprep.subr.bf16.mxu0 %v1691_v0  ;;  %1526 = vmatpush3.bf16.msra.mxu1 %v1657_v28 }
  0x35   : > { %1557 = vmatprep.subr.bf16.mxu1 %v1691_v0 }
  0x36   : > { %1508 = vmatmul.mubr.bf16.vlgmr.msra.gmra.mrb[4].mxu0 %v322_v3  ;;  %v1661_v3 = vld [vmem:[%s2010_s4 + $0x50] sm:$0xff]  }
  0x37   : > { %1532 = vmatpush3.bf16.msra.mxu0 %v1644_v21  ;;  %1547 = vmatprep.mubr.msk.bf16.mxu0 %vm1692_vm0, %v1691_v0  ;;  %v1681_v21 = vld [vmem:[%s2010_s4 + $0x38] sm:$0xff]  }
  0x38   : > { %1533 = vmatprep.subr.bf16.mxu0 %v1691_v0 }
  0x3b   : > { %1534 = vmatpush3.bf16.msra.mxu0 %v1646_v22  ;;  %v1682_v22 = vld [vmem:[%s2010_s4 + $0xb8] sm:$0xff]  }
  0x3c   : > { %1535 = vmatprep.subr.bf16.mxu0 %v1691_v0 }
  0x3f   : > { %1536 = vmatpush3.bf16.msra.mxu0 %v1648_v23 }
  0x40   : > { %1537 = vmatprep.subr.bf16.mxu0 %v1691_v0 }
  0x43   : > { %1538 = vmatpush3.bf16.msra.mxu0 %v1650_v24 }
  0x44   : > { %1539 = vmatprep.subr.bf16.mxu0 %v1691_v0 }
  0x47   : > { %1540 = vmatpush3.bf16.msra.mxu0 %v1652_v25 }
  0x48   : > { %1541 = vmatprep.subr.bf16.mxu0 %v1691_v0 }
  0x4b   : > { %1542 = vmatpush3.bf16.msra.mxu0 %v1654_v26 }
  0x4c   : > { %1543 = vmatprep.subr.bf16.mxu0 %v1691_v0 }
  0x4f   : > { %1544 = vmatpush3.bf16.msra.mxu0 %v1656_v27 }
  0x50   : > { %1545 = vmatprep.subr.bf16.mxu0 %v1691_v0 }
  0x53   : > { %1546 = vmatpush3.bf16.msra.mxu0 %v1658_v29 }
  0x54   : > { %1551 = vmatprep.subr.bf16.mxu0 %v1691_v0 }
  0xe9   : > { %v370_v30 = vpop.f32.mrb[0].mxu0  ;;  %v420_v31 = vpop.f32.mrb[0].mxu1 }
  0xea   : > { %v1483_v32 = vpop.f32.mrb[1].mxu0  ;;  %v1489_v33 = vpop.f32.mrb[1].mxu1 }
  0xeb   : > { %v373_v34 = vpop.f32.mrb[2].mxu0  ;;  %v423_v35 = vpop.f32.mrb[2].mxu1 }
  0xec   : > { %v377_v36 = vpack.c.bf16 %v373_v34, %v370_v30  ;;  %v427_v37 = vpack.c.bf16 %v423_v35, %v420_v31  ;;  %v1484_v38 = vpop.f32.mrb[3].mxu0  ;;  %v1490_v39 = vpop.f32.mrb[3].mxu1 }
  0xee   : > { %1528 = vmatmul.mubr.bf16.vlgmr.msra.gmra.mrb[4].mxu1 %v377_v36  ;;  %1548 = vmatmul.mubr.bf16.vlgmr.msra.gmra.mrb[8].mxu0 %v427_v37 }
  0xef   : > { %1553 = vmatprep.mubr.msk.bf16.mxu0 %vm1692_vm0, %v1691_v0  ;;  %1559 = vmatprep.mubr.msk.bf16.mxu1 %vm1692_vm0, %v1691_v0 }
 0x109   : > { %v543_v40 = vpop.f32.mrb[4].mxu0 }
 0x10a   : > { %v1509_v41 = vpop.f32.mrb[5].mxu0 }
 0x10b   : > { %v546_v42 = vpop.f32.mrb[6].mxu0 }
 0x10c   : > { %v1510_v43 = vpop.f32.mrb[7].mxu0 }
 0x1c1   : > { %v632_v44 = vpop.f32.mrb[4].mxu1  ;;  %v738_v45 = vpop.f32.mrb[8].mxu0 }
 0x1c2   : > { %v633_v46 = vadd.f32 %v632_v44, %v543_v40  ;;  %v1529_v47 = vpop.f32.mrb[5].mxu1  ;;  %v1549_v48 = vpop.f32.mrb[9].mxu0 }
 0x1c3   : > { %v635_v50 = vpop.f32.mrb[6].mxu1  ;;  %v741_v51 = vpop.f32.mrb[10].mxu0 }
 0x1c4   : > { %v745_v52 = vadd.f32 %v738_v45, %v633_v46  ;;  %v636_v53 = vadd.f32 %v635_v50, %v546_v42  ;;  %v1530_v54 = vpop.f32.mrb[7].mxu1  ;;  %v1550_v55 = vpop.f32.mrb[11].mxu0  ;;  %v1404_v42 = vld [vmem:[%s2012_s6] ss:$0 sm:$0xff] }
 0x1c6   : > { %v754_v56 = vadd.f32 %v1343_v49, %v745_v52  ;;  %v746_v57 = vadd.f32 %v741_v51, %v636_v53 }
 0x1c8   : > { %v755_v58 = vadd.f32 %v1343_v49, %v746_v57  ;;  %v756_v59 = vmax.f32 %v754_v56, 0.0 }
 0x1ca   : > { %v757_v60 = vmax.f32 %v755_v58, 0.0 }
 0x1cc   : > { %v758_v61 = vpack.c.bf16 %v757_v60, %v756_v59 }
 0x1ce   : > { %1416 = vst [vmem:[%s313_s11] sm:$0xff] %v758_v61   ;;  %1552 = vmatpush3.bf16.msra.mxu0 %v758_v61  ;;  %1558 = vmatpush3.bf16.msra.mxu1 %v758_v61 }
 0x1cf   : > { %1563 = vmatprep.subr.bf16.mxu1 %v1691_v0  ;;  %1583 = vmatprep.subr.bf16.mxu0 %v1691_v0 }
 0x1d1   : > { %1554 = vmatmul.mubr.msk.bf16.vlgmr.msra.gmra.mrb[12].mxu0 %vm332_vm1, %v1763_v4  ;;  %1560 = vmatmul.mubr.msk.bf16.vlgmr.msra.gmra.mrb[8].mxu1 %vm332_vm1, %v1768_v5  ;;  %v1671_v4 = vld [vmem:[%s2010_s4 + $0x10] sm:$0xff]   ;;  %v1662_v5 = vld [vmem:[%s2010_s4 + $0x58] sm:$0xff]  }
 0x1d2   : > { %1564 = vmatpush3.bf16.msra.mxu1 %v1659_v62  ;;  %1579 = vmatprep.mubr.msk.bf16.mxu1 %vm1692_vm0, %v1691_v0 }
 0x1d3   : > { %1565 = vmatprep.subr.bf16.mxu1 %v1691_v0  ;;  %1584 = vmatpush3.bf16.msra.mxu0 %v1667_v63 }
 0x1d4   : > { %1585 = vmatprep.subr.bf16.mxu0 %v1691_v0  ;;  %1599 = vmatprep.mubr.msk.bf16.mxu0 %vm1692_vm0, %v1691_v0 }
 0x1d6   : > { %1566 = vmatpush3.bf16.msra.mxu1 %v1660_v1 }
 0x1d7   : > { %1567 = vmatprep.subr.bf16.mxu1 %v1691_v0  ;;  %1586 = vmatpush3.bf16.msra.mxu0 %v1669_v2 }
 0x1d8   : > { %1587 = vmatprep.subr.bf16.mxu0 %v1691_v0 }
 0x1da   : > { %1568 = vmatpush3.bf16.msra.mxu1 %v1661_v3 }
 0x1db   : > { %1569 = vmatprep.subr.bf16.mxu1 %v1691_v0  ;;  %1588 = vmatpush3.bf16.msra.mxu0 %v1671_v4 }
 0x1dc   : > { %1589 = vmatprep.subr.bf16.mxu0 %v1691_v0 }
 0x1de   : > { %1570 = vmatpush3.bf16.msra.mxu1 %v1662_v5 }
 0x1df   : > { %1571 = vmatprep.subr.bf16.mxu1 %v1691_v0  ;;  %1590 = vmatpush3.bf16.msra.mxu0 %v1673_v6 }
 0x1e0   : > { %1591 = vmatprep.subr.bf16.mxu0 %v1691_v0 }
 0x1e2   : > { %1572 = vmatpush3.bf16.msra.mxu1 %v1663_v7 }
 0x1e3   : > { %1573 = vmatprep.subr.bf16.mxu1 %v1691_v0  ;;  %1592 = vmatpush3.bf16.msra.mxu0 %v1675_v8 }
 0x1e4   : > { %1593 = vmatprep.subr.bf16.mxu0 %v1691_v0 }
 0x1e6   : > { %1574 = vmatpush3.bf16.msra.mxu1 %v1664_v9 }
 0x1e7   : > { %1575 = vmatprep.subr.bf16.mxu1 %v1691_v0  ;;  %1594 = vmatpush3.bf16.msra.mxu0 %v1677_v10 }
 0x1e8   : > { %1595 = vmatprep.subr.bf16.mxu0 %v1691_v0 }
 0x1ea   : > { %1576 = vmatpush3.bf16.msra.mxu1 %v1665_v11 }
 0x1eb   : > { %1577 = vmatprep.subr.bf16.mxu1 %v1691_v0  ;;  %1596 = vmatpush3.bf16.msra.mxu0 %v1679_v12 }
 0x1ec   : > { %1597 = vmatprep.subr.bf16.mxu0 %v1691_v0 }
 0x1ee   : > { %1578 = vmatpush3.bf16.msra.mxu1 %v1666_v13 }
 0x1ef   : > { %1603 = vmatprep.subr.bf16.mxu1 %v1691_v0  ;;  %1598 = vmatpush3.bf16.msra.mxu0 %v1681_v21 }
 0x1f1   : > { %1580 = vmatmul.mubr.bf16.vlgmr.msra.gmra.mrb[12].mxu1 %v758_v61 }
 0x1f2   : > { %1604 = vmatpush3.bf16.msra.mxu1 %v1668_v14  ;;  %1619 = vmatprep.mubr.msk.bf16.mxu1 %vm1692_vm0, %v1691_v0 }
 0x1f3   : > { %1605 = vmatprep.subr.bf16.mxu1 %v1691_v0 }
 0x1f6   : > { %1606 = vmatpush3.bf16.msra.mxu1 %v1670_v15 }
 0x1f7   : > { %1607 = vmatprep.subr.bf16.mxu1 %v1691_v0 }
 0x1fa   : > { %1608 = vmatpush3.bf16.msra.mxu1 %v1672_v16 }
 0x1fb   : > { %1609 = vmatprep.subr.bf16.mxu1 %v1691_v0 }
 0x1fe   : > { %1610 = vmatpush3.bf16.msra.mxu1 %v1674_v17 }
 0x1ff   : > { %1611 = vmatprep.subr.bf16.mxu1 %v1691_v0 }
 0x202   : > { %1612 = vmatpush3.bf16.msra.mxu1 %v1676_v18 }
 0x203   : > { %1613 = vmatprep.subr.bf16.mxu1 %v1691_v0 }
 0x206   : > { %1614 = vmatpush3.bf16.msra.mxu1 %v1678_v19 }
 0x207   : > { %1615 = vmatprep.subr.bf16.mxu1 %v1691_v0 }
 0x20a   : > { %1616 = vmatpush3.bf16.msra.mxu1 %v1680_v20 }
 0x20b   : > { %1617 = vmatprep.subr.bf16.mxu1 %v1691_v0 }
 0x20e   : > { %1618 = vmatpush3.bf16.msra.mxu1 %v1682_v22 }
 0x2a4   : > { %v802_v23 = vpop.f32.mrb[12].mxu0  ;;  %v844_v24 = vpop.f32.mrb[8].mxu1 }
 0x2a5   : > { %v1555_v25 = vpop.f32.mrb[13].mxu0  ;;  %v1561_v26 = vpop.f32.mrb[9].mxu1 }
 0x2a6   : > { %v805_v27 = vpop.f32.mrb[14].mxu0  ;;  %v847_v28 = vpop.f32.mrb[10].mxu1 }
 0x2a7   : > { %v809_v29 = vpack.c.bf16 %v805_v27, %v802_v23  ;;  %v851_v30 = vpack.c.bf16 %v847_v28, %v844_v24  ;;  %v1556_v31 = vpop.f32.mrb[15].mxu0  ;;  %v1562_v0 = vpop.f32.mrb[11].mxu1 }
 0x2a9   : > { %1600 = vmatmul.mubr.bf16.vlgmr.msra.gmra.mrb[16].mxu0 %v809_v29  ;;  %1620 = vmatmul.mubr.bf16.vlgmr.msra.gmra.mrb[16].mxu1 %v851_v30 }
 0x2c4   : > { %v967_v32 = vpop.f32.mrb[12].mxu1 }
 0x2c5   : > { %v1581_v33 = vpop.f32.mrb[13].mxu1 }
 0x2c6   : > { %v970_v34 = vpop.f32.mrb[14].mxu1 }
 0x2c7   : > { %v1582_v35 = vpop.f32.mrb[15].mxu1 }
 0x37c   : > { %v1056_v36 = vpop.f32.mrb[16].mxu0  ;;  %v1162_v37 = vpop.f32.mrb[16].mxu1 }
 0x37d   : > { %v1057_v38 = vadd.f32 %v1056_v36, %v967_v32  ;;  %v1601_v39 = vpop.f32.mrb[17].mxu0  ;;  %v1621_v40 = vpop.f32.mrb[17].mxu1 }
 0x37e   : > { %v1059_v41 = vpop.f32.mrb[18].mxu0  ;;  %v1165_v43 = vpop.f32.mrb[18].mxu1 }
 0x37f   : > { %v1060_v44 = vadd.f32 %v1059_v41, %v970_v34  ;;  %v1169_v45 = vadd.f32 %v1162_v37, %v1057_v38  ;;  %v1602_v46 = vpop.f32.mrb[19].mxu0  ;;  %v1622_v47 = vpop.f32.mrb[19].mxu1 }
 0x381   : > { %v1178_v48 = vadd.f32 %v1404_v42, %v1169_v45  ;;  %v1170_v49 = vadd.f32 %v1165_v43, %v1060_v44 }
 0x383   : > { %v1180_v50 = vmax.f32 %v1178_v48, 0.0  ;;  %v1179_v51 = vadd.f32 %v1404_v42, %v1170_v49 }
 0x385   : > { %1182 = vst [vmem:[%s318_s26] sm:$0xff] %v1180_v50  ;;  %v1181_v52 = vmax.f32 %v1179_v51, 0.0 }
 0x387   : > { %1183 = vst [vmem:[%s318_s26 + $0x8] sm:$0xff] %v1181_v52 }
 0x388 PF: > { %s19_s27 = sadd.s32 1, %s1689_s27  }
 0x389   : > { %p16_p4 = scmp.ge.s32.totalorder %s19_s27, 4  }
 0x38b   :  { %18 = sbr.rel (!%p16_p4) target bundleno = 1 (0x1), region = 94 }

</bundles_post_ra>
